<compile_context>
chip_gen: v7x
topology: tpu7x:2x2x1
jax: 0.10.0
libtpu: 0.0.40
codegen_flags: <defaults>
</compile_context>

<pallas_src>
import functools
import math

import jax
import jax.numpy as jnp
from jax.experimental import pallas as pl
from jax.experimental.pallas import tpu as pltpu

BN_EPS = 1e-5
LEAKY_SLOPE = 0.01  # nn.LeakyReLU default negative_slope


def _round_up(n, m):
    return ((n + m - 1) // m) * m


def _pad2(a, rows, cols):
    return jnp.pad(a, ((0, rows - a.shape[0]), (0, cols - a.shape[1])))


def _mlp_kernel(nlength, noutputs, *refs):
    """refs = (x_ref, [w1, b1, ..., wL, bL, w_out, b_out], out_ref).

    x tile is bf16 (TM, d_in_pad); weights are bf16 (in_pad, out_pad) with
    eval-BN folded in; biases are f32 (1, out_pad); out tile is f32.
    """
    x_ref = refs[0]
    out_ref = refs[-1]
    params = refs[1:-1]

    h = x_ref[...]  # bf16 (TM, d_in_pad) -- no cast needed for first matmul

    for layer in range(nlength):
        w = params[2 * layer][...]        # bf16 (d_prev_pad, nwidth_pad)
        b = params[2 * layer + 1][...]    # f32  (1, nwidth_pad)
        y = jnp.dot(h, w, preferred_element_type=jnp.float32) + b
        # LeakyReLU (one vmul + one vmax); f32 VPU math is portable to v5e.
        a = jnp.maximum(y, LEAKY_SLOPE * y)
        h = a.astype(jnp.bfloat16)        # single cast per layer for next MXU op
        # Dropout: identity in eval mode.

    w_out = params[2 * nlength][...]      # bf16 (d_pad, nout_pad)
    b_out = params[2 * nlength + 1][...]  # f32  (1, nout_pad)
    logits = jnp.dot(h, w_out, preferred_element_type=jnp.float32) + b_out

    # Mask padded output lanes only when padding exists (trace-time guard).
    if noutputs != logits.shape[1]:
        lane = jax.lax.broadcasted_iota(jnp.int32, logits.shape, 1)
        logits = jnp.where(lane < noutputs, logits, -1e30)

    # Numerically stable softmax over dim=1; exact reciprocal (EUP, cheap).
    m = jnp.max(logits, axis=1, keepdims=True)
    e = jnp.exp(logits - m)
    inv = pl.reciprocal(jnp.sum(e, axis=1, keepdims=True), approx=False)
    out_ref[...] = e * inv


def _kaiming_normal_fan_in_leaky_relu(key, out_features, in_features):
    # torch.nn.init.kaiming_normal_(w, mode='fan_in', nonlinearity='leaky_relu')
    gain = math.sqrt(2.0 / (1.0 + LEAKY_SLOPE ** 2))
    std = gain / math.sqrt(in_features)
    return std * jax.random.normal(key, (out_features, in_features), jnp.float32)


def init_params(key, ninputs, noutputs, nlength, nwidth):
    """Synthetic parameters matching the module's __init__, with eval-mode
    BatchNorm folded into each Linear and feature dims padded to 128 lanes."""
    d_in_pad = _round_up(ninputs, 128)
    nw_pad = _round_up(nwidth, 128)
    nout_pad = _round_up(noutputs, 128)

    params = []
    dim, dim_pad = ninputs, d_in_pad
    for _ in range(nlength):
        key, kw, kb = jax.random.split(key, 3)
        w = _kaiming_normal_fan_in_leaky_relu(kw, nwidth, dim)  # (out, in)
        bound = 1.0 / math.sqrt(dim)
        b = jax.random.uniform(kb, (nwidth,), jnp.float32, -bound, bound)

        # BatchNorm1d(dim) defaults: gamma=1, beta=0, running_mean=0, running_var=1.
        gamma = jnp.ones((dim,), jnp.float32)
        beta = jnp.zeros((dim,), jnp.float32)
        rmean = jnp.zeros((dim,), jnp.float32)
        rvar = jnp.ones((dim,), jnp.float32)

        # Fold eval-mode BN into the Linear: y = (x*scale + shift) @ W.T + b
        scale = gamma * jax.lax.rsqrt(rvar + BN_EPS)   # (dim,)
        shift = beta - rmean * scale                   # (dim,)
        w_t = w.T                                      # (in, out)
        w_fold = w_t * scale[:, None]                  # (in, out)
        b_fold = b + shift @ w_t                       # (out,)

        params.append(_pad2(w_fold, dim_pad, nw_pad).astype(jnp.bfloat16))
        params.append(_pad2(b_fold[None, :], 1, nw_pad))
        dim, dim_pad = nwidth, nw_pad

    key, kw, kb = jax.random.split(key, 3)
    w_out = _kaiming_normal_fan_in_leaky_relu(kw, noutputs, dim)
    bound = 1.0 / math.sqrt(dim)
    b_out = jax.random.uniform(kb, (noutputs,), jnp.float32, -bound, bound)
    params.append(_pad2(w_out.T, dim_pad, nout_pad).astype(jnp.bfloat16))
    params.append(_pad2(b_out[None, :], 1, nout_pad))
    return params


def _physical_vmem_bytes():
    try:
        return int(pltpu.get_tpu_info().vmem_capacity_bytes)
    except Exception:
        return 64 << 20  # conservative: assume v7x (64 MiB per TensorCore)


def _vmem_limit_bytes(tm, params, d_in_pad, nout_pad, weight_buffers, phys_vmem):
    # Resident weights/biases (single- or double-buffered) + double-buffered
    # bf16 x tile and f32 out tile + headroom for Mosaic internal scratch.
    weight_bytes = weight_buffers * sum(
        math.prod(p.shape) * p.dtype.itemsize for p in params)
    act_bytes = 2 * tm * d_in_pad * 2 + 2 * tm * nout_pad * 4
    total = weight_bytes + act_bytes + (8 << 20)
    cap = max(min(phys_vmem - (12 << 20), 108 << 20), 32 << 20)
    return int(min(max(total, 32 << 20), cap))


def model_builder_forward(x, params, nlength, noutputs):
    batch, d_in = x.shape
    d_in_pad = params[0].shape[0]
    nout_pad = params[-1].shape[1]
    phys_vmem = _physical_vmem_bytes()

    # Batch tiling: bound padding waste and aim for >=2 grid steps so the
    # "parallel" axis shards across v7x's two TensorCores; larger tile cap on
    # 128-MiB-VMEM chips (v5e/v6e) to amortize per-grid-step overhead.
    tm_cap = 512 if phys_vmem >= (100 << 20) else 256
    tm = max(16, min(tm_cap, _round_up(-(-batch // 2), 16)))
    batch_pad = _round_up(batch, tm)
    grid = (batch_pad // tm,)

    # bf16 input stream (pad + cast fused in one wrapper pass).
    x_pad = _pad2(x.astype(jnp.bfloat16), batch_pad, d_in_pad)

    flops = 2 * batch_pad * sum(math.prod(p.shape) for p in params[0::2])
    bytes_accessed = (x_pad.size * 2
                      + sum(math.prod(p.shape) * p.dtype.itemsize for p in params)
                      + batch_pad * nout_pad * 4)
    cost = pl.CostEstimate(flops=flops,
                           transcendentals=batch_pad * nout_pad,
                           bytes_accessed=bytes_accessed)

    kernel = functools.partial(_mlp_kernel, nlength, noutputs)
    out_shape = jax.ShapeDtypeStruct((batch_pad, nout_pad), jnp.float32)
    out_spec = pl.BlockSpec((tm, nout_pad), lambda i: (i, 0))

    def run(single_buffer_weights):
        in_specs = [pl.BlockSpec((tm, d_in_pad), lambda i: (i, 0))]
        for p in params:
            if single_buffer_weights:
                # Constant index_map: the block never changes across grid
                # steps, so one pipeline buffer suffices (halves weight VMEM).
                spec = pl.BlockSpec(p.shape, lambda i: (0, 0),
                                    pipeline_mode=pl.Buffered(1))
            else:
                spec = pl.BlockSpec(p.shape, lambda i: (0, 0))
            in_specs.append(spec)
        vmem_limit = _vmem_limit_bytes(
            tm, params, d_in_pad, nout_pad,
            weight_buffers=1 if single_buffer_weights else 2,
            phys_vmem=phys_vmem)
        return pl.pallas_call(
            kernel,
            out_shape=out_shape,
            grid=grid,
            in_specs=in_specs,
            out_specs=out_spec,
            compiler_params=pltpu.CompilerParams(
                dimension_semantics=("parallel",),
                vmem_limit_bytes=vmem_limit,
            ),
            cost_estimate=cost,
        )(x_pad, *params)

    try:
        out = jax.block_until_ready(run(single_buffer_weights=True))
    except Exception:
        # Fallback for jax versions that reject Buffered(1) on pallas_call specs.
        out = run(single_buffer_weights=False)

    if batch_pad != batch or nout_pad != noutputs:
        out = out[:batch, :noutputs]
    return out


if __name__ == "__main__":
    # Small shapes consistent with the module's forward (x: (batch, ninputs)).
    batch, ninputs, noutputs, nlength, nwidth = 32, 32, 8, 2, 32
    dropout_rate = 0.1  # unused in eval-mode forward

    key = jax.random.PRNGKey(0)
    kx, kp = jax.random.split(key)
    x = jax.random.normal(kx, (batch, ninputs), jnp.float32)
    params = init_params(kp, ninputs, noutputs, nlength, nwidth)

    out = model_builder_forward(x, params, nlength, noutputs)
    out = jax.block_until_ready(out)

    # Sanity: shape, non-negativity, and softmax rows summing to 1.
    assert out.shape == (batch, noutputs)
    assert bool(jnp.all(out >= 0.0))
    assert bool(jnp.allclose(jnp.sum(out, axis=1), 1.0, atol=1e-3))
    print("KERNEL_OK")
</pallas_src>

<mosaic_0001>
module attributes {stable_mosaic.version = 11 : i64} {
  func.func @_mlp_kernel(%arg0: i32, %arg1: memref<16x128xbf16, #tpu.memory_space<vmem>>, %arg2: memref<128x128xbf16, #tpu.memory_space<vmem>>, %arg3: memref<1x128xf32, #tpu.memory_space<vmem>>, %arg4: memref<128x128xbf16, #tpu.memory_space<vmem>>, %arg5: memref<1x128xf32, #tpu.memory_space<vmem>>, %arg6: memref<128x128xbf16, #tpu.memory_space<vmem>>, %arg7: memref<1x128xf32, #tpu.memory_space<vmem>>, %arg8: memref<16x128xf32, #tpu.memory_space<vmem>>) attributes {dimension_semantics = [#tpu.dimension_semantics<parallel>], iteration_bounds = array<i64: 2>, scalar_prefetch = 0 : i64, scratch_operands = 0 : i64, tpu.core_type = #tpu.core_type<tc>, window_params = [{transform_indices = @transform_0, window_bounds = array<i64: 16, 128>}, {pipeline_mode = #tpu.pipeline_mode<synchronous>, transform_indices = @transform_1, window_bounds = array<i64: 128, 128>}, {pipeline_mode = #tpu.pipeline_mode<synchronous>, transform_indices = @transform_2, window_bounds = array<i64: 1, 128>}, {pipeline_mode = #tpu.pipeline_mode<synchronous>, transform_indices = @transform_3, window_bounds = array<i64: 128, 128>}, {pipeline_mode = #tpu.pipeline_mode<synchronous>, transform_indices = @transform_4, window_bounds = array<i64: 1, 128>}, {pipeline_mode = #tpu.pipeline_mode<synchronous>, transform_indices = @transform_5, window_bounds = array<i64: 128, 128>}, {pipeline_mode = #tpu.pipeline_mode<synchronous>, transform_indices = @transform_6, window_bounds = array<i64: 1, 128>}, {transform_indices = @transform_7, window_bounds = array<i64: 16, 128>}]} {
    %c0 = arith.constant 0 : index
    %c0_0 = arith.constant 0 : index
    %0 = vector.load %arg1[%c0, %c0_0] : memref<16x128xbf16, #tpu.memory_space<vmem>>, vector<16x128xbf16>
    %c0_1 = arith.constant 0 : index
    %c0_2 = arith.constant 0 : index
    %1 = vector.load %arg2[%c0_1, %c0_2] : memref<128x128xbf16, #tpu.memory_space<vmem>>, vector<128x128xbf16>
    %c0_3 = arith.constant 0 : index
    %c0_4 = arith.constant 0 : index
    %2 = vector.load %arg3[%c0_3, %c0_4] : memref<1x128xf32, #tpu.memory_space<vmem>>, vector<1x128xf32>
    %cst = arith.constant dense<0.000000e+00> : vector<16x128xf32>
    %3 = tpu.matmul %0, %1, %cst {dimension_numbers = #tpu.dot_dimension_numbers<[1], [0], [0], [1], [0, 0, 1, 1], [], []>} : vector<16x128xbf16>, vector<128x128xbf16>, vector<16x128xf32> -> vector<16x128xf32>
    %4 = vector.broadcast %2 : vector<1x128xf32> to vector<16x128xf32>
    %5 = arith.addf %3, %4 : vector<16x128xf32>
    %cst_5 = arith.constant 0.00999999977 : f32
    %6 = vector.broadcast %cst_5 : f32 to vector<16x128xf32>
    %7 = arith.mulf %6, %5 : vector<16x128xf32>
    %8 = arith.maximumf %5, %7 : vector<16x128xf32>
    %9 = arith.truncf %8 : vector<16x128xf32> to vector<16x128xbf16>
    %c0_6 = arith.constant 0 : index
    %c0_7 = arith.constant 0 : index
    %10 = vector.load %arg4[%c0_6, %c0_7] : memref<128x128xbf16, #tpu.memory_space<vmem>>, vector<128x128xbf16>
    %c0_8 = arith.constant 0 : index
    %c0_9 = arith.constant 0 : index
    %11 = vector.load %arg5[%c0_8, %c0_9] : memref<1x128xf32, #tpu.memory_space<vmem>>, vector<1x128xf32>
    %cst_10 = arith.constant dense<0.000000e+00> : vector<16x128xf32>
    %12 = tpu.matmul %9, %10, %cst_10 {dimension_numbers = #tpu.dot_dimension_numbers<[1], [0], [0], [1], [0, 0, 1, 1], [], []>} : vector<16x128xbf16>, vector<128x128xbf16>, vector<16x128xf32> -> vector<16x128xf32>
    %13 = vector.broadcast %11 : vector<1x128xf32> to vector<16x128xf32>
    %14 = arith.addf %12, %13 : vector<16x128xf32>
    %cst_11 = arith.constant 0.00999999977 : f32
    %15 = vector.broadcast %cst_11 : f32 to vector<16x128xf32>
    %16 = arith.mulf %15, %14 : vector<16x128xf32>
    %17 = arith.maximumf %14, %16 : vector<16x128xf32>
    %18 = arith.truncf %17 : vector<16x128xf32> to vector<16x128xbf16>
    %c0_12 = arith.constant 0 : index
    %c0_13 = arith.constant 0 : index
    %19 = vector.load %arg6[%c0_12, %c0_13] : memref<128x128xbf16, #tpu.memory_space<vmem>>, vector<128x128xbf16>
    %c0_14 = arith.constant 0 : index
    %c0_15 = arith.constant 0 : index
    %20 = vector.load %arg7[%c0_14, %c0_15] : memref<1x128xf32, #tpu.memory_space<vmem>>, vector<1x128xf32>
    %cst_16 = arith.constant dense<0.000000e+00> : vector<16x128xf32>
    %21 = tpu.matmul %18, %19, %cst_16 {dimension_numbers = #tpu.dot_dimension_numbers<[1], [0], [0], [1], [0, 0, 1, 1], [], []>} : vector<16x128xbf16>, vector<128x128xbf16>, vector<16x128xf32> -> vector<16x128xf32>
    %22 = vector.broadcast %20 : vector<1x128xf32> to vector<16x128xf32>
    %23 = arith.addf %21, %22 : vector<16x128xf32>
    %24 = tpu.iota {dimensions = array<i32: 1>} : vector<16x128xi32>
    %c8_i32 = arith.constant 8 : i32
    %25 = vector.broadcast %c8_i32 : i32 to vector<16x128xi32>
    %26 = arith.cmpi slt, %24, %25 : vector<16x128xi32>
    %cst_17 = arith.constant -1.000000e+30 : f32
    %27 = vector.broadcast %cst_17 : f32 to vector<16x128xf32>
    %28 = arith.select %26, %23, %27 : vector<16x128xi1>, vector<16x128xf32>
    %cst_18 = arith.constant dense<0xFF800000> : vector<16xf32>
    %29 = vector.multi_reduction <maximumf>, %28, %cst_18 [1] : vector<16x128xf32> to vector<16xf32>
    %30 = vector.shape_cast %29 : vector<16xf32> to vector<16x1xf32>
    %31 = vector.broadcast %30 : vector<16x1xf32> to vector<16x128xf32>
    %32 = arith.subf %28, %31 : vector<16x128xf32>
    %33 = math.exp %32 : vector<16x128xf32>
    %cst_19 = arith.constant dense<0.000000e+00> : vector<16xf32>
    %34 = vector.multi_reduction <add>, %33, %cst_19 [1] : vector<16x128xf32> to vector<16xf32>
    %35 = vector.shape_cast %34 : vector<16xf32> to vector<16x1xf32>
    %36 = tpu.reciprocal %35 : vector<16x1xf32> -> vector<16x1xf32>
    %37 = vector.broadcast %36 : vector<16x1xf32> to vector<16x128xf32>
    %38 = arith.mulf %33, %37 : vector<16x128xf32>
    %c0_20 = arith.constant 0 : index
    %c0_21 = arith.constant 0 : index
    %39 = vector.load %arg8[%c0_20, %c0_21] : memref<16x128xf32, #tpu.memory_space<vmem>>, vector<16x128xf32>
    tpu.vector_store %arg8[%c0_20, %c0_21], %38 {strides = array<i32>} : memref<16x128xf32, #tpu.memory_space<vmem>>, vector<16x128xf32>,
    return
  }
  func.func @transform_0(%arg0: i32) -> (i32, i32) {
    %c0_i32 = arith.constant 0 : i32
    %c0_i32_0 = arith.constant 0 : i32
    return %arg0, %c0_i32 : i32, i32
  }
  func.func @transform_1(%arg0: i32) -> (i32, i32) {
    %c0_i32 = arith.constant 0 : i32
    %c0_i32_0 = arith.constant 0 : i32
    %c0_i32_1 = arith.constant 0 : i32
    return %c0_i32, %c0_i32_0 : i32, i32
  }
  func.func @transform_2(%arg0: i32) -> (i32, i32) {
    %c0_i32 = arith.constant 0 : i32
    %c0_i32_0 = arith.constant 0 : i32
    %c0_i32_1 = arith.constant 0 : i32
    return %c0_i32, %c0_i32_0 : i32, i32
  }
  func.func @transform_3(%arg0: i32) -> (i32, i32) {
    %c0_i32 = arith.constant 0 : i32
    %c0_i32_0 = arith.constant 0 : i32
    %c0_i32_1 = arith.constant 0 : i32
    return %c0_i32, %c0_i32_0 : i32, i32
  }
  func.func @transform_4(%arg0: i32) -> (i32, i32) {
    %c0_i32 = arith.constant 0 : i32
    %c0_i32_0 = arith.constant 0 : i32
    %c0_i32_1 = arith.constant 0 : i32
    return %c0_i32, %c0_i32_0 : i32, i32
  }
  func.func @transform_5(%arg0: i32) -> (i32, i32) {
    %c0_i32 = arith.constant 0 : i32
    %c0_i32_0 = arith.constant 0 : i32
    %c0_i32_1 = arith.constant 0 : i32
    return %c0_i32, %c0_i32_0 : i32, i32
  }
  func.func @transform_6(%arg0: i32) -> (i32, i32) {
    %c0_i32 = arith.constant 0 : i32
    %c0_i32_0 = arith.constant 0 : i32
    %c0_i32_1 = arith.constant 0 : i32
    return %c0_i32, %c0_i32_0 : i32, i32
  }
  func.func @transform_7(%arg0: i32) -> (i32, i32) {
    %c0_i32 = arith.constant 0 : i32
    %c0_i32_0 = arith.constant 0 : i32
    return %arg0, %c0_i32 : i32, i32
  }
}

module attributes {stable_mosaic.version = 11 : i64} {
  func.func @_mlp_kernel(%arg0: i32, %arg1: memref<16x128xbf16, #tpu.memory_space<vmem>>, %arg2: memref<128x128xbf16, #tpu.memory_space<vmem>>, %arg3: memref<1x128xf32, #tpu.memory_space<vmem>>, %arg4: memref<128x128xbf16, #tpu.memory_space<vmem>>, %arg5: memref<1x128xf32, #tpu.memory_space<vmem>>, %arg6: memref<128x128xbf16, #tpu.memory_space<vmem>>, %arg7: memref<1x128xf32, #tpu.memory_space<vmem>>, %arg8: memref<16x128xf32, #tpu.memory_space<vmem>>) attributes {dimension_semantics = [#tpu.dimension_semantics<parallel>], iteration_bounds = array<i64: 2>, scalar_prefetch = 0 : i64, scratch_operands = 0 : i64, tpu.core_type = #tpu.core_type<tc>, window_params = [{transform_indices = @transform_0, window_bounds = array<i64: 16, 128>}, {pipeline_mode = #tpu.pipeline_mode<synchronous>, transform_indices = @transform_1, window_bounds = array<i64: 128, 128>}, {pipeline_mode = #tpu.pipeline_mode<synchronous>, transform_indices = @transform_2, window_bounds = array<i64: 1, 128>}, {pipeline_mode = #tpu.pipeline_mode<synchronous>, transform_indices = @transform_3, window_bounds = array<i64: 128, 128>}, {pipeline_mode = #tpu.pipeline_mode<synchronous>, transform_indices = @transform_4, window_bounds = array<i64: 1, 128>}, {pipeline_mode = #tpu.pipeline_mode<synchronous>, transform_indices = @transform_5, window_bounds = array<i64: 128, 128>}, {pipeline_mode = #tpu.pipeline_mode<synchronous>, transform_indices = @transform_6, window_bounds = array<i64: 1, 128>}, {transform_indices = @transform_7, window_bounds = array<i64: 16, 128>}]} {
    %c0 = arith.constant 0 : index
    %c0_0 = arith.constant 0 : index
    %0 = vector.load %arg1[%c0, %c0_0] : memref<16x128xbf16, #tpu.memory_space<vmem>>, vector<16x128xbf16>
    %c0_1 = arith.constant 0 : index
    %c0_2 = arith.constant 0 : index
    %1 = vector.load %arg2[%c0_1, %c0_2] : memref<128x128xbf16, #tpu.memory_space<vmem>>, vector<128x128xbf16>
    %c0_3 = arith.constant 0 : index
    %c0_4 = arith.constant 0 : index
    %2 = vector.load %arg3[%c0_3, %c0_4] : memref<1x128xf32, #tpu.memory_space<vmem>>, vector<1x128xf32>
    %cst = arith.constant dense<0.000000e+00> : vector<16x128xf32>
    %3 = tpu.matmul %0, %1, %cst {dimension_numbers = #tpu.dot_dimension_numbers<[1], [0], [0], [1], [0, 0, 1, 1], [], []>} : vector<16x128xbf16>, vector<128x128xbf16>, vector<16x128xf32> -> vector<16x128xf32>
    %4 = vector.broadcast %2 : vector<1x128xf32> to vector<16x128xf32>
    %5 = arith.addf %3, %4 : vector<16x128xf32>
    %cst_5 = arith.constant 0.00999999977 : f32
    %6 = vector.broadcast %cst_5 : f32 to vector<16x128xf32>
    %7 = arith.mulf %6, %5 : vector<16x128xf32>
    %8 = arith.maximumf %5, %7 : vector<16x128xf32>
    %9 = arith.truncf %8 : vector<16x128xf32> to vector<16x128xbf16>
    %c0_6 = arith.constant 0 : index
    %c0_7 = arith.constant 0 : index
    %10 = vector.load %arg4[%c0_6, %c0_7] : memref<128x128xbf16, #tpu.memory_space<vmem>>, vector<128x128xbf16>
    %c0_8 = arith.constant 0 : index
    %c0_9 = arith.constant 0 : index
    %11 = vector.load %arg5[%c0_8, %c0_9] : memref<1x128xf32, #tpu.memory_space<vmem>>, vector<1x128xf32>
    %cst_10 = arith.constant dense<0.000000e+00> : vector<16x128xf32>
    %12 = tpu.matmul %9, %10, %cst_10 {dimension_numbers = #tpu.dot_dimension_numbers<[1], [0], [0], [1], [0, 0, 1, 1], [], []>} : vector<16x128xbf16>, vector<128x128xbf16>, vector<16x128xf32> -> vector<16x128xf32>
    %13 = vector.broadcast %11 : vector<1x128xf32> to vector<16x128xf32>
    %14 = arith.addf %12, %13 : vector<16x128xf32>
    %cst_11 = arith.constant 0.00999999977 : f32
    %15 = vector.broadcast %cst_11 : f32 to vector<16x128xf32>
    %16 = arith.mulf %15, %14 : vector<16x128xf32>
    %17 = arith.maximumf %14, %16 : vector<16x128xf32>
    %18 = arith.truncf %17 : vector<16x128xf32> to vector<16x128xbf16>
    %c0_12 = arith.constant 0 : index
    %c0_13 = arith.constant 0 : index
    %19 = vector.load %arg6[%c0_12, %c0_13] : memref<128x128xbf16, #tpu.memory_space<vmem>>, vector<128x128xbf16>
    %c0_14 = arith.constant 0 : index
    %c0_15 = arith.constant 0 : index
    %20 = vector.load %arg7[%c0_14, %c0_15] : memref<1x128xf32, #tpu.memory_space<vmem>>, vector<1x128xf32>
    %cst_16 = arith.constant dense<0.000000e+00> : vector<16x128xf32>
    %21 = tpu.matmul %18, %19, %cst_16 {dimension_numbers = #tpu.dot_dimension_numbers<[1], [0], [0], [1], [0, 0, 1, 1], [], []>} : vector<16x128xbf16>, vector<128x128xbf16>, vector<16x128xf32> -> vector<16x128xf32>
    %22 = vector.broadcast %20 : vector<1x128xf32> to vector<16x128xf32>
    %23 = arith.addf %21, %22 : vector<16x128xf32>
    %24 = tpu.iota {dimensions = array<i32: 1>} : vector<16x128xi32>
    %c8_i32 = arith.constant 8 : i32
    %25 = vector.broadcast %c8_i32 : i32 to vector<16x128xi32>
    %26 = arith.cmpi slt, %24, %25 : vector<16x128xi32>
    %cst_17 = arith.constant -1.000000e+30 : f32
    %27 = vector.broadcast %cst_17 : f32 to vector<16x128xf32>
    %28 = arith.select %26, %23, %27 : vector<16x128xi1>, vector<16x128xf32>
    %cst_18 = arith.constant dense<0xFF800000> : vector<16xf32>
    %29 = vector.multi_reduction <maximumf>, %28, %cst_18 [1] : vector<16x128xf32> to vector<16xf32>
    %30 = vector.shape_cast %29 : vector<16xf32> to vector<16x1xf32>
    %31 = vector.broadcast %30 : vector<16x1xf32> to vector<16x128xf32>
    %32 = arith.subf %28, %31 : vector<16x128xf32>
    %33 = math.exp %32 : vector<16x128xf32>
    %cst_19 = arith.constant dense<0.000000e+00> : vector<16xf32>
    %34 = vector.multi_reduction <add>, %33, %cst_19 [1] : vector<16x128xf32> to vector<16xf32>
    %35 = vector.shape_cast %34 : vector<16xf32> to vector<16x1xf32>
    %36 = tpu.reciprocal %35 : vector<16x1xf32> -> vector<16x1xf32>
    %37 = vector.broadcast %36 : vector<16x1xf32> to vector<16x128xf32>
    %38 = arith.mulf %33, %37 : vector<16x128xf32>
    %c0_20 = arith.constant 0 : index
    %c0_21 = arith.constant 0 : index
    %39 = vector.load %arg8[%c0_20, %c0_21] : memref<16x128xf32, #tpu.memory_space<vmem>>, vector<16x128xf32>
    tpu.vector_store %arg8[%c0_20, %c0_21], %38 {strides = array<i32>} : memref<16x128xf32, #tpu.memory_space<vmem>>, vector<16x128xf32>,
    return
  }
  func.func @transform_0(%arg0: i32) -> (i32, i32) {
    %c0_i32 = arith.constant 0 : i32
    %c0_i32_0 = arith.constant 0 : i32
    return %arg0, %c0_i32 : i32, i32
  }
  func.func @transform_1(%arg0: i32) -> (i32, i32) {
    %c0_i32 = arith.constant 0 : i32
    %c0_i32_0 = arith.constant 0 : i32
    %c0_i32_1 = arith.constant 0 : i32
    return %c0_i32, %c0_i32_0 : i32, i32
  }
  func.func @transform_2(%arg0: i32) -> (i32, i32) {
    %c0_i32 = arith.constant 0 : i32
    %c0_i32_0 = arith.constant 0 : i32
    %c0_i32_1 = arith.constant 0 : i32
    return %c0_i32, %c0_i32_0 : i32, i32
  }
  func.func @transform_3(%arg0: i32) -> (i32, i32) {
    %c0_i32 = arith.constant 0 : i32
    %c0_i32_0 = arith.constant 0 : i32
    %c0_i32_1 = arith.constant 0 : i32
    return %c0_i32, %c0_i32_0 : i32, i32
  }
  func.func @transform_4(%arg0: i32) -> (i32, i32) {
    %c0_i32 = arith.constant 0 : i32
    %c0_i32_0 = arith.constant 0 : i32
    %c0_i32_1 = arith.constant 0 : i32
    return %c0_i32, %c0_i32_0 : i32, i32
  }
  func.func @transform_5(%arg0: i32) -> (i32, i32) {
    %c0_i32 = arith.constant 0 : i32
    %c0_i32_0 = arith.constant 0 : i32
    %c0_i32_1 = arith.constant 0 : i32
    return %c0_i32, %c0_i32_0 : i32, i32
  }
  func.func @transform_6(%arg0: i32) -> (i32, i32) {
    %c0_i32 = arith.constant 0 : i32
    %c0_i32_0 = arith.constant 0 : i32
    %c0_i32_1 = arith.constant 0 : i32
    return %c0_i32, %c0_i32_0 : i32, i32
  }
  func.func @transform_7(%arg0: i32) -> (i32, i32) {
    %c0_i32 = arith.constant 0 : i32
    %c0_i32_0 = arith.constant 0 : i32
    return %arg0, %c0_i32 : i32, i32
  }
}

</mosaic_0001>

<bundles_post_ra>
// kernel: tpu_custom_call.1
= control target key start
LH: loop header
LB: loop body
LE: loop exit
PB: predicated region body
PF: predicated region fallthrough
CT: control target
= control target key end

     0   :  { %12 = vsyncpa [#allocation3], 0  ;;  %s1647_s0 = inlined_call_operand.hbm [shape: bf16[32,128], index: 0, kind: input, shape index: {}]   ;;  %s1648_s1 = inlined_call_operand.hbm [shape: bf16[128,128], index: 1, kind: input, shape index: {}]   ;;  %s1649_s2 = inlined_call_operand.vmem [shape: f32[1,128], index: 2, kind: input, shape index: {}]   ;;  %s1650_s3 = inlined_call_operand.hbm [shape: bf16[128,128], index: 3, kind: input, shape index: {}]   ;;  %s1651_s4 = inlined_call_operand.vmem [shape: f32[1,128], index: 4, kind: input, shape index: {}]   ;;  %s1652_s5 = inlined_call_operand.hbm [shape: bf16[128,128], index: 5, kind: input, shape index: {}]   ;;  %s1653_s6 = inlined_call_operand.vmem [shape: f32[1,128], index: 6, kind: input, shape index: {}]   ;;  %s1654_s7 = inlined_call_operand.hbm [shape: f32[32,128], index: 7, kind: output, shape index: {}]  }
   0x1   :  { %14 = vsyncpa [#allocation3 + $0x1], 0 }
   0x2   :  { %15 = vsyncpa [#allocation6], 0 }
   0x3   :  { %16 = vsyncpa [#allocation9], 0 }
   0x4   :  { %17 = vsyncpa [#allocation4], 0 }
   0x5   :  { %19 = vsyncpa [#allocation4 + $0x1], 0  ;;  %s1333_s24 = smov 0   ;;  %s1335_s25 = smov 0  }
   0x6   :  { %s1337_s26 = smov 0   ;;  %s1339_s27 = smov 0  }
   0x7 LB: > { %s1354_s28 = sadd.s32 4294967295, %s1280_s27   ;;  %s839_s29 = sadd.s32 4294967294, %s1280_s27   ;;  %s1280_s27 = sphi %s1339_s27, %s1680_s27   ;;  %s1276_s26 = sphi %s1337_s26, %s1679_s26   ;;  %s1272_s25 = sphi %s1335_s25, %s1678_s25   ;;  %s1268_s24 = sphi %s1333_s24, %s1677_s24  }
   0x8   : > { %p45_p0 = scmp.ne.s32.totalorder %s1272_s25, %s1268_s24  ;;  %p1655_p1 = scmp.eq.s32.totalorder %s1354_s28, 0 }
   0x9   : > { %p201_p3 = scmp.eq.s32.totalorder %s839_s29, 1  ;;  %p840_p5 = scmp.ge.s32.totalorder %s1280_s27, 1 }
   0xa   : > { %p1363_p4 = por %p1655_p1, %p45_p0  ;;  %p208_p7 = scmp.lt.s32.totalorder %s1280_s27, 3 }
   0xb   : > { %p1368_p6 = por %p201_p3, %p45_p0  ;;  %s1282_s10 = smov [#allocation5]  }
   0xc   : > { %s1659_s30 = scalar_select %p1363_p4, 1, 0 }
   0xd   : > { %s1660_s8 = scalar_select %p1368_p6, 1, 0 }
   0xe   : > { %p1373_p8 = pnand %p840_p5, %p208_p7  ;;  %s220_s11 = sshll.u32 %s1282_s10, 4  ;;  %s1377_s11 = int_to_ptr.vmem [resolvable:$true] %s220_s11 }
   0xf   : > { %1661 = sst [smem:[#allocation15_spill]] %s1660_s8  ;;  %s1283_s13 = smov [#allocation7]  }
  0x10   : > { %s1662_s9 = scalar_select %p1373_p8, 1, 0 }
  0x11   : > { %p992_p9 = pneg %p1373_p8  ;;  %s236_s14 = sshll.u32 %s1283_s13, 4  ;;  %s1388_s14 = int_to_ptr.vmem [resolvable:$true] %s236_s14 }
  0x12   : > { %s1284_s15 = smov [#allocation8]   ;;  %s1092_s19 = scalar_lea.hbm %s1648_s1, 1024 }
  0x13   : > { %p1384_p11 = pnand %p992_p9, %p1655_p1  ;;  %s1390_s16 = sshll.u32 %s1284_s15, 4  ;;  %s253_s16 = int_to_ptr.vmem [resolvable:$true] %s1390_s16 }
  0x14   : > { %p1093_p12 = scmp.ne.s32.totalorder %s1648_s1, %s1092_s19  ;;  %p1099_p5 = scmp.lt.u32.totalorder %s1092_s19, %s1648_s1 }
  0x15   : > { %p1400_p13 = pneg %p1384_p11 }
  0x17   : > { %p1095_p0 = pnand %p1400_p13, %p1093_p12 }
  0x19   : > { %p1096_p3 = pneg %p1095_p0 }
  0x1b   : > { %p1101_p7 = pnand %p1099_p5, %p1096_p3 }
  0x1d   : > { %1104 = shalt.err (!%p1101_p7)
}
  0x1e   : > { %s1105_s10 = scalar_lea.vmem %s1377_s11, 1024  ;;  %p1113_p2 = scmp.lt.s32.totalorder %s1377_s11, %s1377_s11 }
  0x1f   : > { %p1106_p9 = scmp.ne.s32.totalorder %s1377_s11, %s1105_s10  ;;  %p1114_p6 = scmp.lt.s32.totalorder %s1105_s10, %s1105_s10 }
  0x21   : > { %p1108_p10 = pnand %p1106_p9, %p1400_p13  ;;  %p1115_p12 = por %p1114_p6, %p1113_p2 }
  0x23   : > { %p1109_p1 = pneg %p1108_p10 }
  0x25   : > { %p1116_p0 = pnand %p1115_p12, %p1109_p1 }
  0x27   : > { %1119 = shalt.err (!%p1116_p0)
}
  0x28   : > { %s1285_s13 = smov 64   ;;  %s1286_s15 = smov 4  }
  0x29   : > { %995 = dma.hbm_to_vmem [thread:$0]  (!%p1384_p11), %s1648_s1, 1024, %s1377_s11, [#allocation6], %s1285_s13, %s1285_s13, %s1286_s15  }
  0x2a   : > { %s1120_s21 = scalar_lea.hbm %s1650_s3, 1024 }
  0x2b   : > { %p1121_p1 = scmp.ne.s32.totalorder %s1650_s3, %s1120_s21  ;;  %p1127_p10 = scmp.lt.u32.totalorder %s1120_s21, %s1650_s3 }
  0x2d   : > { %p1123_p2 = pnand %p1121_p1, %p1400_p13 }
  0x2f   : > { %p1124_p6 = pneg %p1123_p2 }
  0x31   : > { %p1129_p3 = pnand %p1127_p10, %p1124_p6 }
  0x33   : > { %1132 = shalt.err (!%p1129_p3)
}
  0x34   : > { %s1133_s11 = scalar_lea.vmem %s1388_s14, 1024  ;;  %p1141_p12 = scmp.lt.s32.totalorder %s1388_s14, %s1388_s14 }
  0x35   : > { %p1134_p5 = scmp.ne.s32.totalorder %s1388_s14, %s1133_s11  ;;  %p1142_p0 = scmp.lt.s32.totalorder %s1133_s11, %s1133_s11 }
  0x37   : > { %p1136_p7 = pnand %p1134_p5, %p1400_p13  ;;  %p1143_p1 = por %p1142_p0, %p1141_p12 }
  0x39   : > { %p1137_p9 = pneg %p1136_p7 }
  0x3b   : > { %p1144_p2 = pnand %p1143_p1, %p1137_p9 }
  0x3d   : > { %1147 = shalt.err (!%p1144_p2)
}
  0x3e   : > { %998 = dma.hbm_to_vmem [thread:$0]  (!%p1384_p11), %s1650_s3, 1024, %s1388_s14, [#allocation6], %s1285_s13, %s1285_s13, %s1286_s15  }
  0x3f   : > { %s1148_s20 = scalar_lea.hbm %s1652_s5, 1024 }
  0x40   : > { %p1149_p6 = scmp.ne.s32.totalorder %s1652_s5, %s1148_s20  ;;  %p1155_p5 = scmp.lt.u32.totalorder %s1148_s20, %s1652_s5 }
  0x42   : > { %p1151_p10 = pnand %p1149_p6, %p1400_p13 }
  0x44   : > { %p1152_p3 = pneg %p1151_p10 }
  0x46   : > { %p1157_p7 = pnand %p1155_p5, %p1152_p3 }
  0x48   : > { %1160 = shalt.err (!%p1157_p7)
}
  0x49   : > { %s1161_s11 = scalar_lea.vmem %s253_s16, 1024  ;;  %p1169_p1 = scmp.lt.s32.totalorder %s253_s16, %s253_s16 }
  0x4a   : > { %p1162_p9 = scmp.ne.s32.totalorder %s253_s16, %s1161_s11  ;;  %p1170_p2 = scmp.lt.s32.totalorder %s1161_s11, %s1161_s11 }
  0x4c   : > { %p1164_p12 = pnand %p1162_p9, %p1400_p13  ;;  %p1171_p4 = por %p1170_p2, %p1169_p1 }
  0x4e   : > { %p1165_p0 = pneg %p1164_p12 }
  0x50   : > { %p1172_p8 = pnand %p1171_p4, %p1165_p0 }
  0x52   : > { %1175 = shalt.err (!%p1172_p8)
}
  0x53   : > { %1001 = dma.hbm_to_vmem [thread:$0]  (!%p1384_p11), %s1652_s5, 1024, %s253_s16, [#allocation9], %s1285_s13, %s1285_s13, %s1286_s15  }
  0x54   : > { %s1473_s22 = sadd.s32 1, %s1280_s27   ;;  %s32_s17 = sadd.s32 1, %s1276_s26 }
  0x55   : > { %s29_s12 = ssub.s32 %s1280_s27, %s1473_s22  ;;  %p39_p8 = scmp.ne.s32.totalorder %s1276_s26, %s1272_s25 }
  0x56   : > { %p30_p4 = scmp.eq.s32.totalorder %s29_s12, 0  ;;  %p40_p13 = scmp.eq.s32.totalorder %s1280_s27, 0 }
  0x57   : > { %p1013_p6 = scmp.lt.s32.totalorder %s1280_s27, 2  ;;  %p1665_p3 = scmp.eq.s32.totalorder %s1354_s28, 1 }
  0x58   : > { %s1483_s18 = scalar_select %p30_p4, %s1276_s26, %s32_s17  }
  0x59   : > { %p41_p10 = por %p40_p13, %p39_p8  ;;  %p1487_p5 = por %p1665_p3, %p39_p8 }
  0x5a   : > { %s269_s20 = sand.u32 1, %s1276_s26   ;;  %s887_s21 = sshll.u32 %s1280_s27, 7 }
  0x5b   : > { %s845_s16 = sshll.u32 %s269_s20, 3  ;;  %s1496_s10 = scalar_lea.hbm %s1647_s0, %s887_s21 }
  0x5c   : > { %s273_s11 = scalar_lea.vmem [#allocation2], %s845_s16  ;;  %p1498_p11 = pnand %p1013_p6, %p41_p10 }
  0x5d   : > { %s280_s14 = sshll.u32 %s273_s11, 4  ;;  %s1504_s12 = scalar_lea.sflag [#allocation3], %s269_s20  ;;  %s1502_s14 = int_to_ptr.vmem [resolvable:$true] %s280_s14 }
  0x5e   : > { %s1176_s17 = scalar_lea.hbm %s1496_s10, 128  ;;  %p1178_p9 = pneg %p1498_p11 }
  0x5f   : > { %p1177_p7 = scmp.ne.s32.totalorder %s1496_s10, %s1176_s17  ;;  %s1181_s23 = scalar_lea.hbm %s1647_s0, 256 }
  0x60   : > { %p1182_p1 = scmp.lt.u32.totalorder %s1496_s10, %s1647_s0  ;;  %p1183_p2 = scmp.lt.u32.totalorder %s1181_s23, %s1176_s17 }
  0x61   : > { %p1179_p12 = pnand %p1178_p9, %p1177_p7  ;;  %p1185_p8 = scmp.lt.u32.totalorder %s1176_s17, %s1496_s10 }
  0x62   : > { %p1184_p4 = por %p1183_p2, %p1182_p1 }
  0x63   : > { %p1180_p0 = pneg %p1179_p12 }
  0x64   : > { %p1186_p13 = por %p1185_p8, %p1184_p4 }
  0x66   : > { %p1187_p6 = pnand %p1186_p13, %p1180_p0 }
  0x68   : > { %1190 = shalt.err (!%p1187_p6)
}
  0x69   : > { %s1191_s20 = scalar_lea.vmem %s1502_s14, 128  ;;  %s1287_s21 = smov [#allocation2]  }
  0x6a   : > { %p1192_p10 = scmp.ne.s32.totalorder %s1502_s14, %s1191_s20  ;;  %s1196_s16 = sshll.u32 %s1287_s21, 4  ;;  %s1197_s16 = int_to_ptr.vmem [resolvable:$false] %s1196_s16 }
  0x6b   : > { %s1198_s29 = scalar_lea.vmem %s1197_s16, 256  ;;  %p1199_p12 = scmp.lt.s32.totalorder %s1502_s14, %s1197_s16 }
  0x6c   : > { %p1194_p3 = pnand %p1192_p10, %p1178_p9  ;;  %p1200_p1 = scmp.lt.s32.totalorder %s1198_s29, %s1191_s20 }
  0x6e   : > { %p1195_p7 = pneg %p1194_p3  ;;  %p1201_p2 = por %p1200_p1, %p1199_p12 }
  0x70   : > { %p1202_p4 = pnand %p1201_p2, %p1195_p7 }
  0x72   : > { %1205 = shalt.err (!%p1202_p4)
}
  0x73   : > { %1005 = dma.hbm_to_vmem [thread:$0]  (!%p1498_p11), %s1496_s10, 128, %s1502_s14, %s1504_s12, %s1285_s13, %s1285_s13, %s1286_s15  }
  0x74   : > { %p1668_p9 = scmp.ne.s32.totalorder %s1662_s9, 0 }
  0x75   : > { %s1538_s17 = sand.u32 (!%p1668_p9), 1, %s1272_s25   ;;  %p1669_p0 = scmp.ne.s32.totalorder (!%p1668_p9), %s1659_s30, 0 }
  0x76   : > { %292 = sbr.rel (%p1668_p9) target bundleno = 1157 (0x485), region = 48  ;;  %s849_s23 = sshll.u32 (!%p1668_p9), %s1538_s17, 3 }
  0x77   : > { %s295_s11 = scalar_lea.sflag (!%p1668_p9), [#allocation3], %s1538_s17  ;;  %s1542_s20 = scalar_lea.vmem (!%p1668_p9), [#allocation2], %s849_s23 }
  0x7d   : > { %1251 = dma.done.wait (%p1669_p0), %s295_s11, 128  }
  0x7e   : > { %1253 = vsyncadd (%p1669_p0), %s295_s11, 4294967168  ;;  %p1670_p11 = scmp.eq.s32.totalorder %s1354_s28, 0 }
  0x80   : > { %1255 = dma.done.wait (%p1670_p11), [#allocation6], 2048   ;;  %p1671_p8 = pmov %p1670_p11 }
  0x82   : > { %1257 = vsyncadd (%p1671_p8), [#allocation6], 4294965248  ;;  %p1672_p13 = pmov %p1671_p8 }
  0x83   : > { %p1673_p6 = pmov %p1671_p8 }
  0x84   : > { %1259 = dma.done.wait (%p1672_p13), [#allocation9], 1024  }
  0x85   : > { %1261 = vsyncadd (%p1673_p6), [#allocation9], 4294966272  ;;  %v1288_v0 = vmov 0.0   ;;  %vm1289_vm0 = vmmov 0   ;;  %v1059_v1 = vld [vmem:[#allocation5] sm:$0xff]   ;;  %v1060_v2 = vld [vmem:[#allocation5 + $0x8] sm:$0xff]   ;;  %v698_v50 = vlaneseq }
  0x86   : > { %916 = vmatprep.subr.bf16.mxu0 %v1288_v0  ;;  %932 = vmatprep.mubr.msk.bf16.mxu0 %vm1289_vm0, %v1288_v0  ;;  %v1061_v3 = vld [vmem:[#allocation5 + $0x10] sm:$0xff]   ;;  %v1068_v4 = vld [vmem:[#allocation7] sm:$0xff]   ;;  %v1062_v5 = vld [vmem:[#allocation5 + $0x18] sm:$0xff]   ;;  %s853_s8 = sshll.u32 %s1538_s17, 4  ;;  %s888_s12 = sshll.u32 %s1354_s28, 8 }
  0x87   : > { %936 = vmatprep.subr.bf16.mxu1 %v1288_v0  ;;  %952 = vmatprep.mubr.msk.bf16.mxu1 %vm1289_vm0, %v1288_v0  ;;  %v1069_v6 = vld [vmem:[#allocation7 + $0x8] sm:$0xff]   ;;  %v1063_v7 = vld [vmem:[#allocation5 + $0x20] sm:$0xff]   ;;  %v1070_v8 = vld [vmem:[#allocation7 + $0x10] sm:$0xff]   ;;  %v699_v51 = vand.u32 127, %v698_v50  ;;  %s340_s21 = scalar_lea.vmem [#allocation10], %s853_s8  ;;  %s1601_s11 = scalar_lea.hbm %s1654_s7, %s888_s12 }
  0x88   : > { %917 = vmatpush3.bf16.msra.mxu0 %v1059_v1  ;;  %937 = vmatpush3.bf16.msra.mxu1 %v1068_v4  ;;  %v1064_v9 = vld [vmem:[#allocation5 + $0x28] sm:$0xff]   ;;  %v1071_v10 = vld [vmem:[#allocation7 + $0x18] sm:$0xff]   ;;  %v1065_v11 = vld [vmem:[#allocation5 + $0x30] sm:$0xff]   ;;  %s737_s16 = sshll.u32 %s340_s21, 4  ;;  %s1290_s28 = smov [#allocation10]   ;;  %s1603_s16 = int_to_ptr.vmem [resolvable:$true] %s737_s16 }
  0x89   : > { %918 = vmatprep.subr.bf16.mxu0 %v1288_v0  ;;  %938 = vmatprep.subr.bf16.mxu1 %v1288_v0  ;;  %v1072_v12 = vld [vmem:[#allocation7 + $0x20] sm:$0xff]   ;;  %v1066_v13 = vld [vmem:[#allocation5 + $0x38] sm:$0xff]   ;;  %v1073_v15 = vld [vmem:[#allocation7 + $0x28] sm:$0xff]   ;;  %vm700_vm1 = vcmp.lt.s32.totalorder %v699_v51, 8  ;;  %s1206_s30 = scalar_lea.vmem %s1603_s16, 256  ;;  %s1210_s9 = sshll.u32 %s1290_s28, 4  ;;  %s1211_s9 = int_to_ptr.vmem [resolvable:$false] %s1210_s9 }
  0x8a   : > { %v1067_v14 = vld [vmem:[%s1542_s20] sm:$0xff]   ;;  %v1076_v18 = vld [vmem:[#allocation8] sm:$0xff]   ;;  %v1077_v19 = vld [vmem:[#allocation8 + $0x8] sm:$0xff]   ;;  %s724_s20 = scalar_lea.sflag [#allocation4], %s1538_s17  ;;  %p1207_p10 = scmp.ne.s32.totalorder %s1603_s16, %s1206_s30 }
  0x8b   : > { %v1074_v16 = vld [vmem:[#allocation7 + $0x30] sm:$0xff]   ;;  %v1075_v17 = vld [vmem:[#allocation7 + $0x38] sm:$0xff]   ;;  %v1080_v22 = vld [vmem:[#allocation8 + $0x20] sm:$0xff]   ;;  %s1212_s13 = scalar_lea.vmem %s1211_s9, 512  ;;  %p1213_p12 = scmp.lt.s32.totalorder %s1603_s16, %s1211_s9 }
  0x8c   : > { %919 = vmatpush3.bf16.msra.mxu0 %v1060_v2  ;;  %939 = vmatpush3.bf16.msra.mxu1 %v1069_v6  ;;  %v1078_v20 = vld [vmem:[#allocation8 + $0x10] sm:$0xff]   ;;  %v1079_v21 = vld [vmem:[#allocation8 + $0x18] sm:$0xff]   ;;  %v1081_v35 = vld [vmem:[#allocation8 + $0x28] sm:$0xff]   ;;  %p1208_p3 = pnand %p1207_p10, %p1487_p5  ;;  %p1214_p1 = scmp.lt.s32.totalorder %s1212_s13, %s1206_s30 }
  0x8d   : > { %920 = vmatprep.subr.bf16.mxu0 %v1288_v0  ;;  %940 = vmatprep.subr.bf16.mxu1 %v1288_v0  ;;  %v854_v23 = vld [vmem:[%s1649_s2] ss:$0 sm:$0xff]  ;;  %v1083_v37 = vld [vmem:[#allocation8 + $0x38] sm:$0xff]  }
  0x8e   : > { %v1082_v36 = vld [vmem:[#allocation8 + $0x30] sm:$0xff]   ;;  %p1209_p7 = pneg %p1208_p3  ;;  %p1215_p2 = por %p1214_p1, %p1213_p12 }
  0x8f   : > { %v864_v38 = vld [vmem:[%s1651_s4] ss:$0 sm:$0xff] }
  0x90   : > { %921 = vmatpush3.bf16.msra.mxu0 %v1061_v3  ;;  %941 = vmatpush3.bf16.msra.mxu1 %v1070_v8  ;;  %v873_v52 = vld [vmem:[%s1653_s6] ss:$0 sm:$0xff]  ;;  %p1216_p4 = pnand %p1215_p2, %p1209_p7 }
  0x91   : > { %922 = vmatprep.subr.bf16.mxu0 %v1288_v0  ;;  %942 = vmatprep.subr.bf16.mxu1 %v1288_v0 }
  0x94   : > { %923 = vmatpush3.bf16.msra.mxu0 %v1062_v5  ;;  %943 = vmatpush3.bf16.msra.mxu1 %v1071_v10 }
  0x95   : > { %924 = vmatprep.subr.bf16.mxu0 %v1288_v0  ;;  %944 = vmatprep.subr.bf16.mxu1 %v1288_v0 }
  0x98   : > { %925 = vmatpush3.bf16.msra.mxu0 %v1063_v7  ;;  %945 = vmatpush3.bf16.msra.mxu1 %v1072_v12 }
  0x99   : > { %926 = vmatprep.subr.bf16.mxu0 %v1288_v0  ;;  %946 = vmatprep.subr.bf16.mxu1 %v1288_v0 }
  0x9c   : > { %927 = vmatpush3.bf16.msra.mxu0 %v1064_v9  ;;  %947 = vmatpush3.bf16.msra.mxu1 %v1073_v15 }
  0x9d   : > { %928 = vmatprep.subr.bf16.mxu0 %v1288_v0  ;;  %948 = vmatprep.subr.bf16.mxu1 %v1288_v0 }
  0xa0   : > { %929 = vmatpush3.bf16.msra.mxu0 %v1065_v11  ;;  %949 = vmatpush3.bf16.msra.mxu1 %v1074_v16 }
  0xa1   : > { %930 = vmatprep.subr.bf16.mxu0 %v1288_v0  ;;  %950 = vmatprep.subr.bf16.mxu1 %v1288_v0 }
  0xa4   : > { %931 = vmatpush3.bf16.msra.mxu0 %v1066_v13  ;;  %951 = vmatpush3.bf16.msra.mxu1 %v1075_v17 }
  0xa5   : > { %956 = vmatprep.subr.bf16.mxu0 %v1288_v0 }
  0xa7   : > { %933 = vmatmul.mubr.bf16.vlgmr.msra.gmra.mrb[0].mxu0 %v1067_v14 }
  0xa8   : > { %972 = vmatprep.mubr.msk.bf16.mxu0 %vm1289_vm0, %v1288_v0  ;;  %957 = vmatpush3.bf16.msra.mxu0 %v1076_v18 }
  0xa9   : > { %958 = vmatprep.subr.bf16.mxu0 %v1288_v0 }
  0xac   : > { %959 = vmatpush3.bf16.msra.mxu0 %v1077_v19 }
  0xad   : > { %960 = vmatprep.subr.bf16.mxu0 %v1288_v0 }
  0xb0   : > { %961 = vmatpush3.bf16.msra.mxu0 %v1078_v20 }
  0xb1   : > { %962 = vmatprep.subr.bf16.mxu0 %v1288_v0 }
  0xb4   : > { %963 = vmatpush3.bf16.msra.mxu0 %v1079_v21 }
  0xb5   : > { %964 = vmatprep.subr.bf16.mxu0 %v1288_v0 }
  0xb8   : > { %965 = vmatpush3.bf16.msra.mxu0 %v1080_v22 }
  0xb9   : > { %966 = vmatprep.subr.bf16.mxu0 %v1288_v0 }
  0xbc   : > { %967 = vmatpush3.bf16.msra.mxu0 %v1081_v35 }
  0xbd   : > { %968 = vmatprep.subr.bf16.mxu0 %v1288_v0 }
  0xc0   : > { %969 = vmatpush3.bf16.msra.mxu0 %v1082_v36 }
  0xc1   : > { %970 = vmatprep.subr.bf16.mxu0 %v1288_v0 }
  0xc4   : > { %971 = vmatpush3.bf16.msra.mxu0 %v1083_v37 }
 0x17a   : > { %v457_v24 = vpop.f32.mrb[0].mxu0 }
 0x17b   : > { %v458_v25 = vadd.f32 %v854_v23, %v457_v24  ;;  %v934_v26 = vpop.f32.mrb[1].mxu0 }
 0x17c   : > { %v460_v27 = vpop.f32.mrb[2].mxu0 }
 0x17d   : > { %v464_v28 = vmul.f32 0.01, %v458_v25  ;;  %v461_v29 = vadd.f32 %v854_v23, %v460_v27  ;;  %v935_v30 = vpop.f32.mrb[3].mxu0 }
 0x17f   : > { %v465_v31 = vmul.f32 0.01, %v461_v29  ;;  %v466_v32 = vmax.f32 %v458_v25, %v464_v28 }
 0x181   : > { %v467_v33 = vmax.f32 %v461_v29, %v465_v31 }
 0x183   : > { %v468_v34 = vpack.c.bf16 %v467_v33, %v466_v32 }
 0x185   : > { %953 = vmatmul.mubr.bf16.vlgmr.msra.gmra.mrb[0].mxu1 %v468_v34 }
 0x258   : > { %v574_v39 = vpop.f32.mrb[0].mxu1 }
 0x259   : > { %v575_v40 = vadd.f32 %v864_v38, %v574_v39  ;;  %v954_v41 = vpop.f32.mrb[1].mxu1 }
 0x25a   : > { %v577_v42 = vpop.f32.mrb[2].mxu1 }
 0x25b   : > { %v581_v43 = vmul.f32 0.01, %v575_v40  ;;  %v578_v44 = vadd.f32 %v864_v38, %v577_v42  ;;  %v955_v45 = vpop.f32.mrb[3].mxu1 }
 0x25d   : > { %v582_v46 = vmul.f32 0.01, %v578_v44  ;;  %v583_v47 = vmax.f32 %v575_v40, %v581_v43 }
 0x25f   : > { %v584_v48 = vmax.f32 %v578_v44, %v582_v46 }
 0x261   : > { %v585_v49 = vpack.c.bf16 %v584_v48, %v583_v47 }
 0x263   : > { %973 = vmatmul.mubr.bf16.vlgmr.msra.gmra.mrb[4].mxu0 %v585_v49 }
 0x336   : > { %v691_v53 = vpop.f32.mrb[4].mxu0 }
 0x337   : > { %v692_v54 = vadd.f32 %v873_v52, %v691_v53  ;;  %v974_v55 = vpop.f32.mrb[5].mxu0 }
 0x338   : > { %v694_v56 = vpop.f32.mrb[6].mxu0 }
 0x339   : > { %v695_v57 = vadd.f32 %v873_v52, %v694_v56  ;;  %v975_v58 = vpop.f32.mrb[7].mxu0  ;;  %v701_v59 = vsel %vm700_vm1, %v692_v54, -1e+30 }
 0x33a   : > { %703 = vmax.xlane.f32.xlu0 %v701_v59 }
 0x33b   : > { %v702_v60 = vsel %vm700_vm1, %v695_v57, -1e+30 }
 0x33e   : > { %705 = vmax.xlane.f32.xlu0 %v702_v60 }
 0x3c7   : > { %v704_v61 = vpop.xlane.xlu0 %703 }
 0x3c8   : > { %v707_v62 = vsub.f32 %v701_v59, %v704_v61 }
 0x3ca   : > { %v709_v63 = vmul.f32 1.442695, %v707_v62 }
 0x3cb   : > { %v706_v0 = vpop.xlane.xlu0 %705 }
 0x3cc   : > { %1084 = vpow2.f32 %v709_v63  ;;  %v708_v1 = vsub.f32 %v702_v60, %v706_v0 }
 0x3ce   : > { %v711_v2 = vmul.f32 1.442695, %v708_v1 }
 0x3d0   : > { %1086 = vpow2.f32 %v711_v2 }
 0x3d6   : > { %v1085_v3 = vpop.eup %1084 }
 0x3d7   : > { %713 = vadd.xlane.f32.xlu1 %v1085_v3 }
 0x3da   : > { %v1087_v4 = vpop.eup %1086 }
 0x3db   : > { %715 = vadd.xlane.f32.xlu1 %v1087_v4 }
 0x464   : > { %v714_v5 = vpop.xlane.xlu1 %713 }
 0x465   : > { %1088 = vrcp.f32 %v714_v5 }
 0x468   : > { %v716_v6 = vpop.xlane.xlu1 %715 }
 0x469   : > { %1090 = vrcp.f32 %v716_v6 }
 0x46f   : > { %v1089_v7 = vpop.eup %1088 }
 0x470   : > { %v719_v8 = vmul.f32 %v1089_v7, %v1085_v3 }
 0x472   : > { %721 = vst [vmem:[%s340_s21] sm:$0xff] %v719_v8 }
 0x473   : > { %v1091_v9 = vpop.eup %1090 }
 0x474   : > { %v720_v10 = vmul.f32 %v1091_v9, %v1087_v4 }
 0x476   : > { %722 = vst [vmem:[%s340_s21 + $0x8] sm:$0xff] %v720_v10 }
 0x477   : > { %1219 = shalt.err (!%p1216_p4)
}
 0x478   : > { %s1220_s15 = scalar_lea.hbm %s1601_s11, 256  ;;  %s1224_s8 = scalar_lea.hbm %s1654_s7, 512 }
 0x479   : > { %p1221_p9 = scmp.ne.s32.totalorder %s1601_s11, %s1220_s15  ;;  %p1225_p8 = scmp.lt.u32.totalorder %s1601_s11, %s1654_s7 }
 0x47a   : > { %p1226_p13 = scmp.lt.u32.totalorder %s1224_s8, %s1220_s15  ;;  %p1228_p10 = scmp.lt.u32.totalorder %s1220_s15, %s1601_s11 }
 0x47b   : > { %p1222_p0 = pnand %p1221_p9, %p1487_p5 }
 0x47c   : > { %p1227_p6 = por %p1226_p13, %p1225_p8 }
 0x47d   : > { %p1223_p11 = pneg %p1222_p0 }
 0x47e   : > { %p1229_p3 = por %p1228_p10, %p1227_p6 }
 0x480   : > { %p1230_p7 = pnand %p1229_p3, %p1223_p11 }
 0x482   : > { %1233 = shalt.err (!%p1230_p7)
}
 0x483   : > { %s1291_s29 = smov 128   ;;  %s1292_s23 = smov 8  }
 0x484   : > { %990 = dma.vmem_to_hbm [thread:$0]  (%p1487_p5), %s1603_s16, 256, %s1601_s11, %s724_s20, %s1291_s29, %s1291_s29, %s1292_s23  }
 0x485 PF: > { %s1674_s30 = sld [smem:[#allocation15_spill]]  ;;  %s752_s28 = sand.u32 1, %s1268_s24  }
 0x486   : > { %p1676_p1 = scmp.ge.s32.totalorder %s1280_s27, 2  ;;  %s753_s9 = scalar_lea.sflag [#allocation4], %s752_s28 }
 0x48b   : > { %p1675_p12 = scmp.ne.s32.totalorder %s1674_s30, 0 }
 0x48d   : > { %p1007_p2 = pnand %p1676_p1, %p1675_p12 }
 0x48f   : > { %1263 = dma.done.wait (!%p1007_p2), %s753_s9, 256  }
 0x490   : > { %1265 = vsyncadd (!%p1007_p2), %s753_s9, 4294967040  ;;  %p22_p4 = scmp.ge.s32.totalorder %s1473_s22, 4   ;;  %s1677_s24 = smov %s1272_s25 }
 0x491   : > { %s1678_s25 = smov %s1276_s26  ;;  %s1679_s26 = smov %s1483_s18 }
 0x492   : > { %s1680_s27 = smov %s1473_s22  ;;  %24 = sbr.rel (!%p22_p4) target bundleno = 7 (0x7), region = 105 }
 0x499   :  { %758 = vsyncpa [#allocation3], 1 }
 0x49a   :  { %760 = vsyncpa [#allocation3 + $0x1], 1 }
 0x49b   :  { %761 = vsyncpa [#allocation6], 1 }
 0x49c   :  { %762 = vsyncpa [#allocation9], 1 }
 0x49d   :  { %763 = vsyncpa [#allocation4], 1 }
 0x49e   :  { %765 = vsyncpa [#allocation4 + $0x1], 1 }

// kernel: tpu_custom_call.1
= control target key start
LH: loop header
LB: loop body
LE: loop exit
PB: predicated region body
PF: predicated region fallthrough
CT: control target
= control target key end

     0   :  { %12 = vsyncpa [#allocation3], 0  ;;  %s1647_s0 = inlined_call_operand.hbm [shape: bf16[32,128], index: 0, kind: input, shape index: {}]   ;;  %s1648_s1 = inlined_call_operand.hbm [shape: bf16[128,128], index: 1, kind: input, shape index: {}]   ;;  %s1649_s2 = inlined_call_operand.vmem [shape: f32[1,128], index: 2, kind: input, shape index: {}]   ;;  %s1650_s3 = inlined_call_operand.hbm [shape: bf16[128,128], index: 3, kind: input, shape index: {}]   ;;  %s1651_s4 = inlined_call_operand.vmem [shape: f32[1,128], index: 4, kind: input, shape index: {}]   ;;  %s1652_s5 = inlined_call_operand.hbm [shape: bf16[128,128], index: 5, kind: input, shape index: {}]   ;;  %s1653_s6 = inlined_call_operand.vmem [shape: f32[1,128], index: 6, kind: input, shape index: {}]   ;;  %s1654_s7 = inlined_call_operand.hbm [shape: f32[32,128], index: 7, kind: output, shape index: {}]  }
   0x1   :  { %14 = vsyncpa [#allocation3 + $0x1], 0 }
   0x2   :  { %15 = vsyncpa [#allocation6], 0 }
   0x3   :  { %16 = vsyncpa [#allocation9], 0 }
   0x4   :  { %17 = vsyncpa [#allocation4], 0 }
   0x5   :  { %19 = vsyncpa [#allocation4 + $0x1], 0  ;;  %s1333_s24 = smov 0   ;;  %s1335_s25 = smov 0  }
   0x6   :  { %s1337_s26 = smov 0   ;;  %s1339_s27 = smov 0  }
   0x7 LB: > { %s1354_s28 = sadd.s32 4294967295, %s1280_s27   ;;  %s839_s29 = sadd.s32 4294967294, %s1280_s27   ;;  %s1280_s27 = sphi %s1339_s27, %s1680_s27   ;;  %s1276_s26 = sphi %s1337_s26, %s1679_s26   ;;  %s1272_s25 = sphi %s1335_s25, %s1678_s25   ;;  %s1268_s24 = sphi %s1333_s24, %s1677_s24  }
   0x8   : > { %p45_p0 = scmp.ne.s32.totalorder %s1272_s25, %s1268_s24  ;;  %p1655_p1 = scmp.eq.s32.totalorder %s1354_s28, 0 }
   0x9   : > { %p201_p3 = scmp.eq.s32.totalorder %s839_s29, 1  ;;  %p840_p5 = scmp.ge.s32.totalorder %s1280_s27, 1 }
   0xa   : > { %p1363_p4 = por %p1655_p1, %p45_p0  ;;  %p208_p7 = scmp.lt.s32.totalorder %s1280_s27, 3 }
   0xb   : > { %p1368_p6 = por %p201_p3, %p45_p0  ;;  %s1282_s10 = smov [#allocation5]  }
   0xc   : > { %s1659_s30 = scalar_select %p1363_p4, 1, 0 }
   0xd   : > { %s1660_s8 = scalar_select %p1368_p6, 1, 0 }
   0xe   : > { %p1373_p8 = pnand %p840_p5, %p208_p7  ;;  %s220_s11 = sshll.u32 %s1282_s10, 4  ;;  %s1377_s11 = int_to_ptr.vmem [resolvable:$true] %s220_s11 }
   0xf   : > { %1661 = sst [smem:[#allocation15_spill]] %s1660_s8  ;;  %s1283_s13 = smov [#allocation7]  }
  0x10   : > { %s1662_s9 = scalar_select %p1373_p8, 1, 0 }
  0x11   : > { %p992_p9 = pneg %p1373_p8  ;;  %s236_s14 = sshll.u32 %s1283_s13, 4  ;;  %s1388_s14 = int_to_ptr.vmem [resolvable:$true] %s236_s14 }
  0x12   : > { %s1284_s15 = smov [#allocation8]   ;;  %s1092_s19 = scalar_lea.hbm %s1648_s1, 1024 }
  0x13   : > { %p1384_p11 = pnand %p992_p9, %p1655_p1  ;;  %s1390_s16 = sshll.u32 %s1284_s15, 4  ;;  %s253_s16 = int_to_ptr.vmem [resolvable:$true] %s1390_s16 }
  0x14   : > { %p1093_p12 = scmp.ne.s32.totalorder %s1648_s1, %s1092_s19  ;;  %p1099_p5 = scmp.lt.u32.totalorder %s1092_s19, %s1648_s1 }
  0x15   : > { %p1400_p13 = pneg %p1384_p11 }
  0x17   : > { %p1095_p0 = pnand %p1400_p13, %p1093_p12 }
  0x19   : > { %p1096_p3 = pneg %p1095_p0 }
  0x1b   : > { %p1101_p7 = pnand %p1099_p5, %p1096_p3 }
  0x1d   : > { %1104 = shalt.err (!%p1101_p7)
}
  0x1e   : > { %s1105_s10 = scalar_lea.vmem %s1377_s11, 1024  ;;  %p1113_p2 = scmp.lt.s32.totalorder %s1377_s11, %s1377_s11 }
  0x1f   : > { %p1106_p9 = scmp.ne.s32.totalorder %s1377_s11, %s1105_s10  ;;  %p1114_p6 = scmp.lt.s32.totalorder %s1105_s10, %s1105_s10 }
  0x21   : > { %p1108_p10 = pnand %p1106_p9, %p1400_p13  ;;  %p1115_p12 = por %p1114_p6, %p1113_p2 }
  0x23   : > { %p1109_p1 = pneg %p1108_p10 }
  0x25   : > { %p1116_p0 = pnand %p1115_p12, %p1109_p1 }
  0x27   : > { %1119 = shalt.err (!%p1116_p0)
}
  0x28   : > { %s1285_s13 = smov 64   ;;  %s1286_s15 = smov 4  }
  0x29   : > { %995 = dma.hbm_to_vmem [thread:$0]  (!%p1384_p11), %s1648_s1, 1024, %s1377_s11, [#allocation6], %s1285_s13, %s1285_s13, %s1286_s15  }
  0x2a   : > { %s1120_s21 = scalar_lea.hbm %s1650_s3, 1024 }
  0x2b   : > { %p1121_p1 = scmp.ne.s32.totalorder %s1650_s3, %s1120_s21  ;;  %p1127_p10 = scmp.lt.u32.totalorder %s1120_s21, %s1650_s3 }
  0x2d   : > { %p1123_p2 = pnand %p1121_p1, %p1400_p13 }
  0x2f   : > { %p1124_p6 = pneg %p1123_p2 }
  0x31   : > { %p1129_p3 = pnand %p1127_p10, %p1124_p6 }
  0x33   : > { %1132 = shalt.err (!%p1129_p3)
}
  0x34   : > { %s1133_s11 = scalar_lea.vmem %s1388_s14, 1024  ;;  %p1141_p12 = scmp.lt.s32.totalorder %s1388_s14, %s1388_s14 }
  0x35   : > { %p1134_p5 = scmp.ne.s32.totalorder %s1388_s14, %s1133_s11  ;;  %p1142_p0 = scmp.lt.s32.totalorder %s1133_s11, %s1133_s11 }
  0x37   : > { %p1136_p7 = pnand %p1134_p5, %p1400_p13  ;;  %p1143_p1 = por %p1142_p0, %p1141_p12 }
  0x39   : > { %p1137_p9 = pneg %p1136_p7 }
  0x3b   : > { %p1144_p2 = pnand %p1143_p1, %p1137_p9 }
  0x3d   : > { %1147 = shalt.err (!%p1144_p2)
}
  0x3e   : > { %998 = dma.hbm_to_vmem [thread:$0]  (!%p1384_p11), %s1650_s3, 1024, %s1388_s14, [#allocation6], %s1285_s13, %s1285_s13, %s1286_s15  }
  0x3f   : > { %s1148_s20 = scalar_lea.hbm %s1652_s5, 1024 }
  0x40   : > { %p1149_p6 = scmp.ne.s32.totalorder %s1652_s5, %s1148_s20  ;;  %p1155_p5 = scmp.lt.u32.totalorder %s1148_s20, %s1652_s5 }
  0x42   : > { %p1151_p10 = pnand %p1149_p6, %p1400_p13 }
  0x44   : > { %p1152_p3 = pneg %p1151_p10 }
  0x46   : > { %p1157_p7 = pnand %p1155_p5, %p1152_p3 }
  0x48   : > { %1160 = shalt.err (!%p1157_p7)
}
  0x49   : > { %s1161_s11 = scalar_lea.vmem %s253_s16, 1024  ;;  %p1169_p1 = scmp.lt.s32.totalorder %s253_s16, %s253_s16 }
  0x4a   : > { %p1162_p9 = scmp.ne.s32.totalorder %s253_s16, %s1161_s11  ;;  %p1170_p2 = scmp.lt.s32.totalorder %s1161_s11, %s1161_s11 }
  0x4c   : > { %p1164_p12 = pnand %p1162_p9, %p1400_p13  ;;  %p1171_p4 = por %p1170_p2, %p1169_p1 }
  0x4e   : > { %p1165_p0 = pneg %p1164_p12 }
  0x50   : > { %p1172_p8 = pnand %p1171_p4, %p1165_p0 }
  0x52   : > { %1175 = shalt.err (!%p1172_p8)
}
  0x53   : > { %1001 = dma.hbm_to_vmem [thread:$0]  (!%p1384_p11), %s1652_s5, 1024, %s253_s16, [#allocation9], %s1285_s13, %s1285_s13, %s1286_s15  }
  0x54   : > { %s1473_s22 = sadd.s32 1, %s1280_s27   ;;  %s32_s17 = sadd.s32 1, %s1276_s26 }
  0x55   : > { %s29_s12 = ssub.s32 %s1280_s27, %s1473_s22  ;;  %p39_p8 = scmp.ne.s32.totalorder %s1276_s26, %s1272_s25 }
  0x56   : > { %p30_p4 = scmp.eq.s32.totalorder %s29_s12, 0  ;;  %p40_p13 = scmp.eq.s32.totalorder %s1280_s27, 0 }
  0x57   : > { %p1013_p6 = scmp.lt.s32.totalorder %s1280_s27, 2  ;;  %p1665_p3 = scmp.eq.s32.totalorder %s1354_s28, 1 }
  0x58   : > { %s1483_s18 = scalar_select %p30_p4, %s1276_s26, %s32_s17  }
  0x59   : > { %p41_p10 = por %p40_p13, %p39_p8  ;;  %p1487_p5 = por %p1665_p3, %p39_p8 }
  0x5a   : > { %s269_s20 = sand.u32 1, %s1276_s26   ;;  %s887_s21 = sshll.u32 %s1280_s27, 7 }
  0x5b   : > { %s845_s16 = sshll.u32 %s269_s20, 3  ;;  %s1496_s10 = scalar_lea.hbm %s1647_s0, %s887_s21 }
  0x5c   : > { %s273_s11 = scalar_lea.vmem [#allocation2], %s845_s16  ;;  %p1498_p11 = pnand %p1013_p6, %p41_p10 }
  0x5d   : > { %s280_s14 = sshll.u32 %s273_s11, 4  ;;  %s1504_s12 = scalar_lea.sflag [#allocation3], %s269_s20  ;;  %s1502_s14 = int_to_ptr.vmem [resolvable:$true] %s280_s14 }
  0x5e   : > { %s1176_s17 = scalar_lea.hbm %s1496_s10, 128  ;;  %p1178_p9 = pneg %p1498_p11 }
  0x5f   : > { %p1177_p7 = scmp.ne.s32.totalorder %s1496_s10, %s1176_s17  ;;  %s1181_s23 = scalar_lea.hbm %s1647_s0, 256 }
  0x60   : > { %p1182_p1 = scmp.lt.u32.totalorder %s1496_s10, %s1647_s0  ;;  %p1183_p2 = scmp.lt.u32.totalorder %s1181_s23, %s1176_s17 }
  0x61   : > { %p1179_p12 = pnand %p1178_p9, %p1177_p7  ;;  %p1185_p8 = scmp.lt.u32.totalorder %s1176_s17, %s1496_s10 }
  0x62   : > { %p1184_p4 = por %p1183_p2, %p1182_p1 }
  0x63   : > { %p1180_p0 = pneg %p1179_p12 }
  0x64   : > { %p1186_p13 = por %p1185_p8, %p1184_p4 }
  0x66   : > { %p1187_p6 = pnand %p1186_p13, %p1180_p0 }
  0x68   : > { %1190 = shalt.err (!%p1187_p6)
}
  0x69   : > { %s1191_s20 = scalar_lea.vmem %s1502_s14, 128  ;;  %s1287_s21 = smov [#allocation2]  }
  0x6a   : > { %p1192_p10 = scmp.ne.s32.totalorder %s1502_s14, %s1191_s20  ;;  %s1196_s16 = sshll.u32 %s1287_s21, 4  ;;  %s1197_s16 = int_to_ptr.vmem [resolvable:$false] %s1196_s16 }
  0x6b   : > { %s1198_s29 = scalar_lea.vmem %s1197_s16, 256  ;;  %p1199_p12 = scmp.lt.s32.totalorder %s1502_s14, %s1197_s16 }
  0x6c   : > { %p1194_p3 = pnand %p1192_p10, %p1178_p9  ;;  %p1200_p1 = scmp.lt.s32.totalorder %s1198_s29, %s1191_s20 }
  0x6e   : > { %p1195_p7 = pneg %p1194_p3  ;;  %p1201_p2 = por %p1200_p1, %p1199_p12 }
  0x70   : > { %p1202_p4 = pnand %p1201_p2, %p1195_p7 }
  0x72   : > { %1205 = shalt.err (!%p1202_p4)
}
  0x73   : > { %1005 = dma.hbm_to_vmem [thread:$0]  (!%p1498_p11), %s1496_s10, 128, %s1502_s14, %s1504_s12, %s1285_s13, %s1285_s13, %s1286_s15  }
  0x74   : > { %p1668_p9 = scmp.ne.s32.totalorder %s1662_s9, 0 }
  0x75   : > { %s1538_s17 = sand.u32 (!%p1668_p9), 1, %s1272_s25   ;;  %p1669_p0 = scmp.ne.s32.totalorder (!%p1668_p9), %s1659_s30, 0 }
  0x76   : > { %292 = sbr.rel (%p1668_p9) target bundleno = 1157 (0x485), region = 48  ;;  %s849_s23 = sshll.u32 (!%p1668_p9), %s1538_s17, 3 }
  0x77   : > { %s295_s11 = scalar_lea.sflag (!%p1668_p9), [#allocation3], %s1538_s17  ;;  %s1542_s20 = scalar_lea.vmem (!%p1668_p9), [#allocation2], %s849_s23 }
  0x7d   : > { %1251 = dma.done.wait (%p1669_p0), %s295_s11, 128  }
  0x7e   : > { %1253 = vsyncadd (%p1669_p0), %s295_s11, 4294967168  ;;  %p1670_p11 = scmp.eq.s32.totalorder %s1354_s28, 0 }
  0x80   : > { %1255 = dma.done.wait (%p1670_p11), [#allocation6], 2048   ;;  %p1671_p8 = pmov %p1670_p11 }
  0x82   : > { %1257 = vsyncadd (%p1671_p8), [#allocation6], 4294965248  ;;  %p1672_p13 = pmov %p1671_p8 }
  0x83   : > { %p1673_p6 = pmov %p1671_p8 }
  0x84   : > { %1259 = dma.done.wait (%p1672_p13), [#allocation9], 1024  }
  0x85   : > { %1261 = vsyncadd (%p1673_p6), [#allocation9], 4294966272  ;;  %v1288_v0 = vmov 0.0   ;;  %vm1289_vm0 = vmmov 0   ;;  %v1059_v1 = vld [vmem:[#allocation5] sm:$0xff]   ;;  %v1060_v2 = vld [vmem:[#allocation5 + $0x8] sm:$0xff]   ;;  %v698_v50 = vlaneseq }
  0x86   : > { %916 = vmatprep.subr.bf16.mxu0 %v1288_v0  ;;  %932 = vmatprep.mubr.msk.bf16.mxu0 %vm1289_vm0, %v1288_v0  ;;  %v1061_v3 = vld [vmem:[#allocation5 + $0x10] sm:$0xff]   ;;  %v1068_v4 = vld [vmem:[#allocation7] sm:$0xff]   ;;  %v1062_v5 = vld [vmem:[#allocation5 + $0x18] sm:$0xff]   ;;  %s853_s8 = sshll.u32 %s1538_s17, 4  ;;  %s888_s12 = sshll.u32 %s1354_s28, 8 }
  0x87   : > { %936 = vmatprep.subr.bf16.mxu1 %v1288_v0  ;;  %952 = vmatprep.mubr.msk.bf16.mxu1 %vm1289_vm0, %v1288_v0  ;;  %v1069_v6 = vld [vmem:[#allocation7 + $0x8] sm:$0xff]   ;;  %v1063_v7 = vld [vmem:[#allocation5 + $0x20] sm:$0xff]   ;;  %v1070_v8 = vld [vmem:[#allocation7 + $0x10] sm:$0xff]   ;;  %v699_v51 = vand.u32 127, %v698_v50  ;;  %s340_s21 = scalar_lea.vmem [#allocation10], %s853_s8  ;;  %s1601_s11 = scalar_lea.hbm %s1654_s7, %s888_s12 }
  0x88   : > { %917 = vmatpush3.bf16.msra.mxu0 %v1059_v1  ;;  %937 = vmatpush3.bf16.msra.mxu1 %v1068_v4  ;;  %v1064_v9 = vld [vmem:[#allocation5 + $0x28] sm:$0xff]   ;;  %v1071_v10 = vld [vmem:[#allocation7 + $0x18] sm:$0xff]   ;;  %v1065_v11 = vld [vmem:[#allocation5 + $0x30] sm:$0xff]   ;;  %s737_s16 = sshll.u32 %s340_s21, 4  ;;  %s1290_s28 = smov [#allocation10]   ;;  %s1603_s16 = int_to_ptr.vmem [resolvable:$true] %s737_s16 }
  0x89   : > { %918 = vmatprep.subr.bf16.mxu0 %v1288_v0  ;;  %938 = vmatprep.subr.bf16.mxu1 %v1288_v0  ;;  %v1072_v12 = vld [vmem:[#allocation7 + $0x20] sm:$0xff]   ;;  %v1066_v13 = vld [vmem:[#allocation5 + $0x38] sm:$0xff]   ;;  %v1073_v15 = vld [vmem:[#allocation7 + $0x28] sm:$0xff]   ;;  %vm700_vm1 = vcmp.lt.s32.totalorder %v699_v51, 8  ;;  %s1206_s30 = scalar_lea.vmem %s1603_s16, 256  ;;  %s1210_s9 = sshll.u32 %s1290_s28, 4  ;;  %s1211_s9 = int_to_ptr.vmem [resolvable:$false] %s1210_s9 }
  0x8a   : > { %v1067_v14 = vld [vmem:[%s1542_s20] sm:$0xff]   ;;  %v1076_v18 = vld [vmem:[#allocation8] sm:$0xff]   ;;  %v1077_v19 = vld [vmem:[#allocation8 + $0x8] sm:$0xff]   ;;  %s724_s20 = scalar_lea.sflag [#allocation4], %s1538_s17  ;;  %p1207_p10 = scmp.ne.s32.totalorder %s1603_s16, %s1206_s30 }
  0x8b   : > { %v1074_v16 = vld [vmem:[#allocation7 + $0x30] sm:$0xff]   ;;  %v1075_v17 = vld [vmem:[#allocation7 + $0x38] sm:$0xff]   ;;  %v1080_v22 = vld [vmem:[#allocation8 + $0x20] sm:$0xff]   ;;  %s1212_s13 = scalar_lea.vmem %s1211_s9, 512  ;;  %p1213_p12 = scmp.lt.s32.totalorder %s1603_s16, %s1211_s9 }
  0x8c   : > { %919 = vmatpush3.bf16.msra.mxu0 %v1060_v2  ;;  %939 = vmatpush3.bf16.msra.mxu1 %v1069_v6  ;;  %v1078_v20 = vld [vmem:[#allocation8 + $0x10] sm:$0xff]   ;;  %v1079_v21 = vld [vmem:[#allocation8 + $0x18] sm:$0xff]   ;;  %v1081_v35 = vld [vmem:[#allocation8 + $0x28] sm:$0xff]   ;;  %p1208_p3 = pnand %p1207_p10, %p1487_p5  ;;  %p1214_p1 = scmp.lt.s32.totalorder %s1212_s13, %s1206_s30 }
  0x8d   : > { %920 = vmatprep.subr.bf16.mxu0 %v1288_v0  ;;  %940 = vmatprep.subr.bf16.mxu1 %v1288_v0  ;;  %v854_v23 = vld [vmem:[%s1649_s2] ss:$0 sm:$0xff]  ;;  %v1083_v37 = vld [vmem:[#allocation8 + $0x38] sm:$0xff]  }
  0x8e   : > { %v1082_v36 = vld [vmem:[#allocation8 + $0x30] sm:$0xff]   ;;  %p1209_p7 = pneg %p1208_p3  ;;  %p1215_p2 = por %p1214_p1, %p1213_p12 }
  0x8f   : > { %v864_v38 = vld [vmem:[%s1651_s4] ss:$0 sm:$0xff] }
  0x90   : > { %921 = vmatpush3.bf16.msra.mxu0 %v1061_v3  ;;  %941 = vmatpush3.bf16.msra.mxu1 %v1070_v8  ;;  %v873_v52 = vld [vmem:[%s1653_s6] ss:$0 sm:$0xff]  ;;  %p1216_p4 = pnand %p1215_p2, %p1209_p7 }
  0x91   : > { %922 = vmatprep.subr.bf16.mxu0 %v1288_v0  ;;  %942 = vmatprep.subr.bf16.mxu1 %v1288_v0 }
  0x94   : > { %923 = vmatpush3.bf16.msra.mxu0 %v1062_v5  ;;  %943 = vmatpush3.bf16.msra.mxu1 %v1071_v10 }
  0x95   : > { %924 = vmatprep.subr.bf16.mxu0 %v1288_v0  ;;  %944 = vmatprep.subr.bf16.mxu1 %v1288_v0 }
  0x98   : > { %925 = vmatpush3.bf16.msra.mxu0 %v1063_v7  ;;  %945 = vmatpush3.bf16.msra.mxu1 %v1072_v12 }
  0x99   : > { %926 = vmatprep.subr.bf16.mxu0 %v1288_v0  ;;  %946 = vmatprep.subr.bf16.mxu1 %v1288_v0 }
  0x9c   : > { %927 = vmatpush3.bf16.msra.mxu0 %v1064_v9  ;;  %947 = vmatpush3.bf16.msra.mxu1 %v1073_v15 }
  0x9d   : > { %928 = vmatprep.subr.bf16.mxu0 %v1288_v0  ;;  %948 = vmatprep.subr.bf16.mxu1 %v1288_v0 }
  0xa0   : > { %929 = vmatpush3.bf16.msra.mxu0 %v1065_v11  ;;  %949 = vmatpush3.bf16.msra.mxu1 %v1074_v16 }
  0xa1   : > { %930 = vmatprep.subr.bf16.mxu0 %v1288_v0  ;;  %950 = vmatprep.subr.bf16.mxu1 %v1288_v0 }
  0xa4   : > { %931 = vmatpush3.bf16.msra.mxu0 %v1066_v13  ;;  %951 = vmatpush3.bf16.msra.mxu1 %v1075_v17 }
  0xa5   : > { %956 = vmatprep.subr.bf16.mxu0 %v1288_v0 }
  0xa7   : > { %933 = vmatmul.mubr.bf16.vlgmr.msra.gmra.mrb[0].mxu0 %v1067_v14 }
  0xa8   : > { %972 = vmatprep.mubr.msk.bf16.mxu0 %vm1289_vm0, %v1288_v0  ;;  %957 = vmatpush3.bf16.msra.mxu0 %v1076_v18 }
  0xa9   : > { %958 = vmatprep.subr.bf16.mxu0 %v1288_v0 }
  0xac   : > { %959 = vmatpush3.bf16.msra.mxu0 %v1077_v19 }
  0xad   : > { %960 = vmatprep.subr.bf16.mxu0 %v1288_v0 }
  0xb0   : > { %961 = vmatpush3.bf16.msra.mxu0 %v1078_v20 }
  0xb1   : > { %962 = vmatprep.subr.bf16.mxu0 %v1288_v0 }
  0xb4   : > { %963 = vmatpush3.bf16.msra.mxu0 %v1079_v21 }
  0xb5   : > { %964 = vmatprep.subr.bf16.mxu0 %v1288_v0 }
  0xb8   : > { %965 = vmatpush3.bf16.msra.mxu0 %v1080_v22 }
  0xb9   : > { %966 = vmatprep.subr.bf16.mxu0 %v1288_v0 }
  0xbc   : > { %967 = vmatpush3.bf16.msra.mxu0 %v1081_v35 }
  0xbd   : > { %968 = vmatprep.subr.bf16.mxu0 %v1288_v0 }
  0xc0   : > { %969 = vmatpush3.bf16.msra.mxu0 %v1082_v36 }
  0xc1   : > { %970 = vmatprep.subr.bf16.mxu0 %v1288_v0 }
  0xc4   : > { %971 = vmatpush3.bf16.msra.mxu0 %v1083_v37 }
 0x17a   : > { %v457_v24 = vpop.f32.mrb[0].mxu0 }
 0x17b   : > { %v458_v25 = vadd.f32 %v854_v23, %v457_v24  ;;  %v934_v26 = vpop.f32.mrb[1].mxu0 }
 0x17c   : > { %v460_v27 = vpop.f32.mrb[2].mxu0 }
 0x17d   : > { %v464_v28 = vmul.f32 0.01, %v458_v25  ;;  %v461_v29 = vadd.f32 %v854_v23, %v460_v27  ;;  %v935_v30 = vpop.f32.mrb[3].mxu0 }
 0x17f   : > { %v465_v31 = vmul.f32 0.01, %v461_v29  ;;  %v466_v32 = vmax.f32 %v458_v25, %v464_v28 }
 0x181   : > { %v467_v33 = vmax.f32 %v461_v29, %v465_v31 }
 0x183   : > { %v468_v34 = vpack.c.bf16 %v467_v33, %v466_v32 }
 0x185   : > { %953 = vmatmul.mubr.bf16.vlgmr.msra.gmra.mrb[0].mxu1 %v468_v34 }
 0x258   : > { %v574_v39 = vpop.f32.mrb[0].mxu1 }
 0x259   : > { %v575_v40 = vadd.f32 %v864_v38, %v574_v39  ;;  %v954_v41 = vpop.f32.mrb[1].mxu1 }
 0x25a   : > { %v577_v42 = vpop.f32.mrb[2].mxu1 }
 0x25b   : > { %v581_v43 = vmul.f32 0.01, %v575_v40  ;;  %v578_v44 = vadd.f32 %v864_v38, %v577_v42  ;;  %v955_v45 = vpop.f32.mrb[3].mxu1 }
 0x25d   : > { %v582_v46 = vmul.f32 0.01, %v578_v44  ;;  %v583_v47 = vmax.f32 %v575_v40, %v581_v43 }
 0x25f   : > { %v584_v48 = vmax.f32 %v578_v44, %v582_v46 }
 0x261   : > { %v585_v49 = vpack.c.bf16 %v584_v48, %v583_v47 }
 0x263   : > { %973 = vmatmul.mubr.bf16.vlgmr.msra.gmra.mrb[4].mxu0 %v585_v49 }
 0x336   : > { %v691_v53 = vpop.f32.mrb[4].mxu0 }
 0x337   : > { %v692_v54 = vadd.f32 %v873_v52, %v691_v53  ;;  %v974_v55 = vpop.f32.mrb[5].mxu0 }
 0x338   : > { %v694_v56 = vpop.f32.mrb[6].mxu0 }
 0x339   : > { %v695_v57 = vadd.f32 %v873_v52, %v694_v56  ;;  %v975_v58 = vpop.f32.mrb[7].mxu0  ;;  %v701_v59 = vsel %vm700_vm1, %v692_v54, -1e+30 }
 0x33a   : > { %703 = vmax.xlane.f32.xlu0 %v701_v59 }
 0x33b   : > { %v702_v60 = vsel %vm700_vm1, %v695_v57, -1e+30 }
 0x33e   : > { %705 = vmax.xlane.f32.xlu0 %v702_v60 }
 0x3c7   : > { %v704_v61 = vpop.xlane.xlu0 %703 }
 0x3c8   : > { %v707_v62 = vsub.f32 %v701_v59, %v704_v61 }
 0x3ca   : > { %v709_v63 = vmul.f32 1.442695, %v707_v62 }
 0x3cb   : > { %v706_v0 = vpop.xlane.xlu0 %705 }
 0x3cc   : > { %1084 = vpow2.f32 %v709_v63  ;;  %v708_v1 = vsub.f32 %v702_v60, %v706_v0 }
 0x3ce   : > { %v711_v2 = vmul.f32 1.442695, %v708_v1 }
 0x3d0   : > { %1086 = vpow2.f32 %v711_v2 }
 0x3d6   : > { %v1085_v3 = vpop.eup %1084 }
 0x3d7   : > { %713 = vadd.xlane.f32.xlu1 %v1085_v3 }
 0x3da   : > { %v1087_v4 = vpop.eup %1086 }
 0x3db   : > { %715 = vadd.xlane.f32.xlu1 %v1087_v4 }
 0x464   : > { %v714_v5 = vpop.xlane.xlu1 %713 }
 0x465   : > { %1088 = vrcp.f32 %v714_v5 }
 0x468   : > { %v716_v6 = vpop.xlane.xlu1 %715 }
 0x469   : > { %1090 = vrcp.f32 %v716_v6 }
 0x46f   : > { %v1089_v7 = vpop.eup %1088 }
 0x470   : > { %v719_v8 = vmul.f32 %v1089_v7, %v1085_v3 }
 0x472   : > { %721 = vst [vmem:[%s340_s21] sm:$0xff] %v719_v8 }
 0x473   : > { %v1091_v9 = vpop.eup %1090 }
 0x474   : > { %v720_v10 = vmul.f32 %v1091_v9, %v1087_v4 }
 0x476   : > { %722 = vst [vmem:[%s340_s21 + $0x8] sm:$0xff] %v720_v10 }
 0x477   : > { %1219 = shalt.err (!%p1216_p4)
}
 0x478   : > { %s1220_s15 = scalar_lea.hbm %s1601_s11, 256  ;;  %s1224_s8 = scalar_lea.hbm %s1654_s7, 512 }
 0x479   : > { %p1221_p9 = scmp.ne.s32.totalorder %s1601_s11, %s1220_s15  ;;  %p1225_p8 = scmp.lt.u32.totalorder %s1601_s11, %s1654_s7 }
 0x47a   : > { %p1226_p13 = scmp.lt.u32.totalorder %s1224_s8, %s1220_s15  ;;  %p1228_p10 = scmp.lt.u32.totalorder %s1220_s15, %s1601_s11 }
 0x47b   : > { %p1222_p0 = pnand %p1221_p9, %p1487_p5 }
 0x47c   : > { %p1227_p6 = por %p1226_p13, %p1225_p8 }
 0x47d   : > { %p1223_p11 = pneg %p1222_p0 }
 0x47e   : > { %p1229_p3 = por %p1228_p10, %p1227_p6 }
 0x480   : > { %p1230_p7 = pnand %p1229_p3, %p1223_p11 }
 0x482   : > { %1233 = shalt.err (!%p1230_p7)
}
 0x483   : > { %s1291_s29 = smov 128   ;;  %s1292_s23 = smov 8  }
 0x484   : > { %990 = dma.vmem_to_hbm [thread:$0]  (%p1487_p5), %s1603_s16, 256, %s1601_s11, %s724_s20, %s1291_s29, %s1291_s29, %s1292_s23  }
 0x485 PF: > { %s1674_s30 = sld [smem:[#allocation15_spill]]  ;;  %s752_s28 = sand.u32 1, %s1268_s24  }
 0x486   : > { %p1676_p1 = scmp.ge.s32.totalorder %s1280_s27, 2  ;;  %s753_s9 = scalar_lea.sflag [#allocation4], %s752_s28 }
 0x48b   : > { %p1675_p12 = scmp.ne.s32.totalorder %s1674_s30, 0 }
 0x48d   : > { %p1007_p2 = pnand %p1676_p1, %p1675_p12 }
 0x48f   : > { %1263 = dma.done.wait (!%p1007_p2), %s753_s9, 256  }
 0x490   : > { %1265 = vsyncadd (!%p1007_p2), %s753_s9, 4294967040  ;;  %p22_p4 = scmp.ge.s32.totalorder %s1473_s22, 4   ;;  %s1677_s24 = smov %s1272_s25 }
 0x491   : > { %s1678_s25 = smov %s1276_s26  ;;  %s1679_s26 = smov %s1483_s18 }
 0x492   : > { %s1680_s27 = smov %s1473_s22  ;;  %24 = sbr.rel (!%p22_p4) target bundleno = 7 (0x7), region = 105 }
 0x499   :  { %758 = vsyncpa [#allocation3], 1 }
 0x49a   :  { %760 = vsyncpa [#allocation3 + $0x1], 1 }
 0x49b   :  { %761 = vsyncpa [#allocation6], 1 }
 0x49c   :  { %762 = vsyncpa [#allocation9], 1 }
 0x49d   :  { %763 = vsyncpa [#allocation4], 1 }
 0x49e   :  { %765 = vsyncpa [#allocation4 + $0x1], 1 }

</bundles_post_ra>
